<compile_context>
chip_gen: v7x
topology: tpu7x:2x2x1
jax: 0.10.0
libtpu: 0.0.40
codegen_flags: <defaults>
</compile_context>

<pallas_src>
import math
import functools

import jax
import jax.numpy as jnp
from jax import lax
from jax.experimental import pallas as pl
from jax.experimental.pallas import tpu as pltpu


# ----------------------------------------------------------------------------
# Kernel 1: tiled fused linear (x @ W + b) with K-reduction accumulator.
# ----------------------------------------------------------------------------
def _linear_kernel(x_ref, w_ref, b_ref, o_ref, acc_ref):
    k = pl.program_id(2)

    @pl.when(k == 0)
    def _init():
        acc_ref[...] = jnp.zeros_like(acc_ref)

    acc_ref[...] += jnp.dot(
        x_ref[...], w_ref[...], preferred_element_type=jnp.float32
    )

    @pl.when(k == pl.num_programs(2) - 1)
    def _finalize():
        o_ref[...] = (acc_ref[...] + b_ref[...].astype(jnp.float32)).astype(
            o_ref.dtype
        )


def _pick_tile(dim, want):
    """Largest of (want, dim) that tiles dim; fall back to full dim."""
    if dim <= want:
        return dim
    return want if dim % want == 0 else dim


def pallas_linear(x2d, w, b, *, tm=256, tn=256, tk=512):
    """x2d: (M, K), w: (K, N), b: (N,) -> (M, N)."""
    m, kdim = x2d.shape
    n = w.shape[1]
    tm = _pick_tile(m, tm)
    tn = _pick_tile(n, tn)
    tk = _pick_tile(kdim, tk)
    grid = (m // tm, n // tn, kdim // tk)

    itemsize = jnp.dtype(x2d.dtype).itemsize
    cost = pl.CostEstimate(
        flops=int(2 * m * n * kdim),
        transcendentals=0,
        bytes_accessed=int((m * kdim + kdim * n + m * n + n) * itemsize),
    )

    return pl.pallas_call(
        _linear_kernel,
        out_shape=jax.ShapeDtypeStruct((m, n), x2d.dtype),
        grid_spec=pltpu.PrefetchScalarGridSpec(
            num_scalar_prefetch=0,
            grid=grid,
            in_specs=[
                pl.BlockSpec((tm, tk), lambda i, j, k: (i, k)),
                pl.BlockSpec((tk, tn), lambda i, j, k: (k, j)),
                pl.BlockSpec((1, tn), lambda i, j, k: (0, j)),
            ],
            out_specs=pl.BlockSpec((tm, tn), lambda i, j, k: (i, j)),
            scratch_shapes=[pltpu.VMEM((tm, tn), jnp.float32)],
        ),
        compiler_params=pltpu.CompilerParams(
            dimension_semantics=("parallel", "parallel", "arbitrary"),
            vmem_limit_bytes=64 * 1024 * 1024,
        ),
        cost_estimate=cost,
    )(x2d, w, b.reshape(1, n))


# ----------------------------------------------------------------------------
# Kernel 2: flash-style causal attention.  One (batch, head, q_block) owns the
# VMEM scratch (running max m, running sum l, f32 accumulator); the kv axis is
# the innermost "arbitrary" grid axis.  Fully-masked (above-diagonal) kv
# blocks are skipped both for compute (pl.when) and for DMA (clamped K/V
# index_maps: the same block index is requested again, so no new copy fires).
# ----------------------------------------------------------------------------
def _flash_attn_kernel(q_ref, k_ref, v_ref, o_ref, m_ref, l_ref, acc_ref, *, scale):
    qi = pl.program_id(2)
    ki = pl.program_id(3)

    @pl.when(ki == 0)
    def _init():
        m_ref[...] = jnp.full_like(m_ref, -jnp.inf)
        l_ref[...] = jnp.zeros_like(l_ref)
        acc_ref[...] = jnp.zeros_like(acc_ref)

    @pl.when(ki <= qi)  # causal block skipping: above-diagonal blocks do nothing
    def _compute():
        # fold 1/sqrt(hs) into q (tq x hs elements instead of tq x tkv)
        q = q_ref[...] * jnp.asarray(scale, q_ref.dtype)
        # S = q @ k^T via dot_general contracting the last dims (no k.T copy);
        # operands stay in their native dtype, f32 accumulation on the MXU.
        s = lax.dot_general(
            q, k_ref[...], (((1,), (1,)), ((), ())),
            preferred_element_type=jnp.float32,
        )  # (tq, tkv) f32

        # causal mask is only non-trivial on the diagonal block (ki == qi)
        rows = lax.broadcasted_iota(jnp.int32, s.shape, 0)
        cols = lax.broadcasted_iota(jnp.int32, s.shape, 1)
        s = jnp.where((ki < qi) | (rows >= cols), s, -1e30)

        # online softmax update
        m_prev = m_ref[...]
        m_new = jnp.maximum(m_prev, jnp.max(s, axis=-1, keepdims=True))
        alpha = jnp.exp(m_prev - m_new)
        p = jnp.exp(s - m_new)

        l_ref[...] = alpha * l_ref[...] + jnp.sum(p, axis=-1, keepdims=True)
        acc_ref[...] = alpha * acc_ref[...] + jnp.dot(
            p.astype(v_ref.dtype), v_ref[...], preferred_element_type=jnp.float32
        )
        m_ref[...] = m_new

    @pl.when(ki == pl.num_programs(3) - 1)
    def _finalize():
        inv_l = pl.reciprocal(l_ref[...], approx=True)  # EUP slot, not VPU divide
        o_ref[...] = (acc_ref[...] * inv_l).astype(o_ref.dtype)


def pallas_causal_attention(qkv, *, block=256):
    """qkv: (B, T, 3, H, hs) packed c_attn output -> (B, T, H, hs)."""
    b, t, _, h, hs = qkv.shape
    blk = t if (t <= block or t % block != 0) else block
    n_blk = t // blk
    scale = 1.0 / math.sqrt(hs)

    # Q / K / V and the head are selected purely via the index_map (no split,
    # no transpose in HBM).  K/V block index is clamped to min(ki, qi): for
    # skipped (above-diagonal) iterations the previous block index repeats, so
    # the pipeline issues no new DMA for data the kernel will never touch.
    q_spec = pl.BlockSpec(
        (None, blk, None, None, hs),
        lambda bi, hi, qi, ki: (bi, qi, 0, hi, 0))
    k_spec = pl.BlockSpec(
        (None, blk, None, None, hs),
        lambda bi, hi, qi, ki: (bi, jnp.minimum(ki, qi), 1, hi, 0))
    v_spec = pl.BlockSpec(
        (None, blk, None, None, hs),
        lambda bi, hi, qi, ki: (bi, jnp.minimum(ki, qi), 2, hi, 0))
    o_spec = pl.BlockSpec(
        (None, blk, None, hs),
        lambda bi, hi, qi, ki: (bi, qi, hi, 0))

    itemsize = jnp.dtype(qkv.dtype).itemsize
    cost = pl.CostEstimate(
        flops=int(2 * b * h * t * t * hs),            # ~2 matmuls, causal half
        transcendentals=int(b * h * t * t // 2),      # exp
        bytes_accessed=int(4 * b * t * h * hs * itemsize),
    )

    return pl.pallas_call(
        functools.partial(_flash_attn_kernel, scale=scale),
        out_shape=jax.ShapeDtypeStruct((b, t, h, hs), qkv.dtype),
        grid_spec=pltpu.PrefetchScalarGridSpec(
            num_scalar_prefetch=0,
            grid=(b, h, n_blk, n_blk),
            in_specs=[q_spec, k_spec, v_spec],
            out_specs=o_spec,
            scratch_shapes=[
                pltpu.VMEM((blk, 1), jnp.float32),    # running max m
                pltpu.VMEM((blk, 1), jnp.float32),    # running sum l
                pltpu.VMEM((blk, hs), jnp.float32),   # output accumulator
            ],
        ),
        compiler_params=pltpu.CompilerParams(
            dimension_semantics=("parallel", "parallel", "parallel", "arbitrary"),
            vmem_limit_bytes=64 * 1024 * 1024,
        ),
        cost_estimate=cost,
    )(qkv, qkv, qkv)


# ----------------------------------------------------------------------------
# Module wrapper (mirrors CausalSelfAttention.forward)
# ----------------------------------------------------------------------------
def causal_self_attention(x, params, nb_head):
    """x: (B, T, C) -> (B, T, C)."""
    b, t, c = x.shape
    hs = c // nb_head

    # qkv = self.c_attn(x)
    qkv = pallas_linear(x.reshape(b * t, c), params["w_attn"], params["b_attn"])
    # free reshape: (B*T, 3C) -> (B, T, 3, H, hs); no split / transpose HBM pass
    qkv = qkv.reshape(b, t, 3, nb_head, hs)

    # y = F.scaled_dot_product_attention(q, k, v, is_causal=True)
    y = pallas_causal_attention(qkv)                  # (B, T, H, hs)

    # free reshape concatenates heads; y = self.c_proj(y)
    y = pallas_linear(y.reshape(b * t, c), params["w_proj"], params["b_proj"])
    return y.reshape(b, t, c)


def init_params(key, embed_size):
    k1, k2, k3, k4 = jax.random.split(key, 4)
    return {
        "w_attn": 0.02 * jax.random.normal(k1, (embed_size, 3 * embed_size), jnp.float32),
        "b_attn": 0.02 * jax.random.normal(k2, (3 * embed_size,), jnp.float32),
        "w_proj": 0.02 * jax.random.normal(k3, (embed_size, embed_size), jnp.float32),
        "b_proj": 0.02 * jax.random.normal(k4, (embed_size,), jnp.float32),
    }


def reference(x, params, nb_head):
    """Pure-JAX reference matching the PyTorch forward."""
    b, t, c = x.shape
    hs = c // nb_head
    qkv = x @ params["w_attn"] + params["b_attn"]
    q, k, v = jnp.split(qkv, 3, axis=2)
    q = q.reshape(b, t, nb_head, hs).transpose(0, 2, 1, 3)
    k = k.reshape(b, t, nb_head, hs).transpose(0, 2, 1, 3)
    v = v.reshape(b, t, nb_head, hs).transpose(0, 2, 1, 3)
    s = jnp.einsum("bhqd,bhkd->bhqk", q, k) / math.sqrt(hs)
    mask = jnp.tril(jnp.ones((t, t), bool))
    s = jnp.where(mask, s, -jnp.inf)
    p = jax.nn.softmax(s, axis=-1)
    y = jnp.einsum("bhqk,bhkd->bhqd", p, v)
    y = y.transpose(0, 2, 1, 3).reshape(b, t, c)
    return y @ params["w_proj"] + params["b_proj"]


if __name__ == "__main__":
    # primary small test: batch=2, seq=8, embed=32, heads=4 (head_size=8)
    B, T, C, H = 2, 8, 32, 4
    key = jax.random.PRNGKey(0)
    kx, kp = jax.random.split(key)
    x = jax.random.normal(kx, (B, T, C), jnp.float32)
    params = init_params(kp, C)

    out = jax.block_until_ready(causal_self_attention(x, params, H))
    ref = reference(x, params, H)
    assert out.shape == (B, T, C)
    assert jnp.allclose(out, ref, atol=2e-3, rtol=2e-3), (
        f"mismatch vs reference (max abs err {float(jnp.max(jnp.abs(out - ref)))})"
    )

    # secondary test exercising the multi-block flash path (online softmax,
    # causal block skipping, clamped K/V index_maps, tiled linear grid):
    # seq=512, embed=128, heads=2.
    B2, T2, C2, H2 = 2, 512, 128, 2
    kx2, kp2 = jax.random.split(jax.random.PRNGKey(0), 2)
    x2 = jax.random.normal(kx2, (B2, T2, C2), jnp.float32)
    params2 = init_params(kp2, C2)
    out2 = jax.block_until_ready(causal_self_attention(x2, params2, H2))
    ref2 = reference(x2, params2, H2)
    assert jnp.allclose(out2, ref2, atol=2e-3, rtol=2e-3), (
        f"multi-block mismatch (max abs err {float(jnp.max(jnp.abs(out2 - ref2)))})"
    )

    print("KERNEL_OK")
</pallas_src>

<mosaic_0001>
module attributes {stable_mosaic.version = 11 : i64} {
  func.func @_linear_kernel(%arg0: i32, %arg1: i32, %arg2: i32, %arg3: memref<16x32xf32, #tpu.memory_space<vmem>>, %arg4: memref<32x96xf32, #tpu.memory_space<vmem>>, %arg5: memref<1x96xf32, #tpu.memory_space<vmem>>, %arg6: memref<16x96xf32, #tpu.memory_space<vmem>>, %arg7: memref<16x96xf32, #tpu.memory_space<vmem>>) attributes {dimension_semantics = [#tpu.dimension_semantics<parallel>, #tpu.dimension_semantics<parallel>, #tpu.dimension_semantics<arbitrary>], iteration_bounds = array<i64: 1, 1, 1>, scalar_prefetch = 0 : i64, scratch_operands = 1 : i64, tpu.core_type = #tpu.core_type<tc>, window_params = [{transform_indices = @transform_0, window_bounds = array<i64: 16, 32>}, {transform_indices = @transform_1, window_bounds = array<i64: 32, 96>}, {transform_indices = @transform_2, window_bounds = array<i64: 1, 96>}, {transform_indices = @transform_3, window_bounds = array<i64: 16, 96>}]} {
    %c0_i32 = arith.constant 0 : i32
    %0 = arith.cmpi eq, %arg2, %c0_i32 : i32
    %1 = arith.extui %0 : i1 to i32
    %c0_i32_0 = arith.constant 0 : i32
    %2 = arith.cmpi ne, %1, %c0_i32_0 : i32
    scf.if %2 {
      %cst_10 = arith.constant 0.000000e+00 : f32
      %12 = vector.broadcast %cst_10 : f32 to vector<16x96xf32>
      %c0_11 = arith.constant 0 : index
      %c0_12 = arith.constant 0 : index
      %13 = vector.load %arg7[%c0_11, %c0_12] : memref<16x96xf32, #tpu.memory_space<vmem>>, vector<16x96xf32>
      tpu.vector_store %arg7[%c0_11, %c0_12], %12 {strides = array<i32>} : memref<16x96xf32, #tpu.memory_space<vmem>>, vector<16x96xf32>,
    } else {
    }
    %c0 = arith.constant 0 : index
    %c0_1 = arith.constant 0 : index
    %3 = vector.load %arg7[%c0, %c0_1] : memref<16x96xf32, #tpu.memory_space<vmem>>, vector<16x96xf32>
    %c0_2 = arith.constant 0 : index
    %c0_3 = arith.constant 0 : index
    %4 = vector.load %arg3[%c0_2, %c0_3] : memref<16x32xf32, #tpu.memory_space<vmem>>, vector<16x32xf32>
    %c0_4 = arith.constant 0 : index
    %c0_5 = arith.constant 0 : index
    %5 = vector.load %arg4[%c0_4, %c0_5] : memref<32x96xf32, #tpu.memory_space<vmem>>, vector<32x96xf32>
    %cst = arith.constant dense<0.000000e+00> : vector<16x96xf32>
    %6 = tpu.matmul %4, %5, %cst {dimension_numbers = #tpu.dot_dimension_numbers<[1], [0], [0], [1], [0, 0, 1, 1], [], []>} : vector<16x32xf32>, vector<32x96xf32>, vector<16x96xf32> -> vector<16x96xf32>
    %7 = arith.addf %3, %6 : vector<16x96xf32>
    %c0_6 = arith.constant 0 : index
    %c0_7 = arith.constant 0 : index
    %8 = vector.load %arg7[%c0_6, %c0_7] : memref<16x96xf32, #tpu.memory_space<vmem>>, vector<16x96xf32>
    tpu.vector_store %arg7[%c0_6, %c0_7], %7 {strides = array<i32>} : memref<16x96xf32, #tpu.memory_space<vmem>>, vector<16x96xf32>,
    %c0_i32_8 = arith.constant 0 : i32
    %9 = arith.cmpi eq, %arg2, %c0_i32_8 : i32
    %10 = arith.extui %9 : i1 to i32
    %c0_i32_9 = arith.constant 0 : i32
    %11 = arith.cmpi ne, %10, %c0_i32_9 : i32
    scf.if %11 {
      %c0_10 = arith.constant 0 : index
      %c0_11 = arith.constant 0 : index
      %12 = vector.load %arg7[%c0_10, %c0_11] : memref<16x96xf32, #tpu.memory_space<vmem>>, vector<16x96xf32>
      %c0_12 = arith.constant 0 : index
      %c0_13 = arith.constant 0 : index
      %13 = vector.load %arg5[%c0_12, %c0_13] : memref<1x96xf32, #tpu.memory_space<vmem>>, vector<1x96xf32>
      %14 = vector.broadcast %13 : vector<1x96xf32> to vector<16x96xf32>
      %15 = arith.addf %12, %14 : vector<16x96xf32>
      %c0_14 = arith.constant 0 : index
      %c0_15 = arith.constant 0 : index
      %16 = vector.load %arg6[%c0_14, %c0_15] : memref<16x96xf32, #tpu.memory_space<vmem>>, vector<16x96xf32>
      tpu.vector_store %arg6[%c0_14, %c0_15], %15 {strides = array<i32>} : memref<16x96xf32, #tpu.memory_space<vmem>>, vector<16x96xf32>,
    } else {
    }
    return
  }
  func.func @transform_0(%arg0: i32, %arg1: i32, %arg2: i32) -> (i32, i32) {
    %c0_i32 = arith.constant 0 : i32
    return %arg0, %arg2 : i32, i32
  }
  func.func @transform_1(%arg0: i32, %arg1: i32, %arg2: i32) -> (i32, i32) {
    %c0_i32 = arith.constant 0 : i32
    return %arg2, %arg1 : i32, i32
  }
  func.func @transform_2(%arg0: i32, %arg1: i32, %arg2: i32) -> (i32, i32) {
    %c0_i32 = arith.constant 0 : i32
    %c0_i32_0 = arith.constant 0 : i32
    return %c0_i32, %arg1 : i32, i32
  }
  func.func @transform_3(%arg0: i32, %arg1: i32, %arg2: i32) -> (i32, i32) {
    %c0_i32 = arith.constant 0 : i32
    return %arg0, %arg1 : i32, i32
  }
}

</mosaic_0001>

<bundles_post_ra>
// kernel: tpu_custom_call.1
= control target key start
LH: loop header
LB: loop body
LE: loop exit
PB: predicated region body
PF: predicated region fallthrough
CT: control target
= control target key end

     0   :  { %8 = vsyncpa [#allocation4], 0  ;;  %s416_s0 = inlined_call_operand.hbm [shape: f32[16,32], index: 0, kind: input, shape index: {}]   ;;  %s417_s1 = inlined_call_operand.hbm [shape: f32[32,96], index: 1, kind: input, shape index: {}]   ;;  %s418_s2 = inlined_call_operand.hbm [shape: f32[1,96], index: 2, kind: input, shape index: {}]   ;;  %s419_s3 = inlined_call_operand.hbm [shape: f32[16,96], index: 3, kind: output, shape index: {}]  }
   0x1   :  { %9 = vsyncpa [#allocation7], 0 }
   0x2   :  { %10 = vsyncpa [#allocation5], 0  ;;  %s319_s12 = smov [#allocation6]   ;;  %s320_s14 = smov [#allocation3]  }
   0x3   :  { %s28_s13 = sshll.u32 %s319_s12, 4  ;;  %s16_s15 = sshll.u32 %s320_s14, 4  ;;  %s29_s13 = int_to_ptr.vmem [resolvable:$true] %s28_s13  ;;  %s346_s15 = int_to_ptr.vmem [resolvable:$true] %s16_s15 }
   0x4   :  { %s225_s18 = scalar_lea.hbm %s417_s1, 512 }
   0x5   :  { %p226_p0 = scmp.ne.s32.totalorder %s417_s1, %s225_s18  ;;  %p229_p1 = scmp.lt.u32.totalorder %s225_s18, %s417_s1 }
   0x7   :  { %p231_p2 = pnand %p229_p1, %p226_p0 }
   0x9   :  { %234 = shalt.err (!%p231_p2)
}
   0xa   :  { %s235_s23 = scalar_lea.vmem %s29_s13, 512  ;;  %p240_p4 = scmp.lt.s32.totalorder %s29_s13, %s29_s13 }
   0xb   :  { %p236_p3 = scmp.ne.s32.totalorder %s29_s13, %s235_s23  ;;  %p241_p5 = scmp.lt.s32.totalorder %s235_s23, %s235_s23 }
   0xd   :  { %p242_p6 = por %p241_p5, %p240_p4 }
   0xf   :  { %p243_p7 = pnand %p242_p6, %p236_p3 }
  0x11   :  { %246 = shalt.err (!%p243_p7)
}
  0x12   :  { %s321_s24 = smov 128   ;;  %s322_s25 = smov 8  }
  0x13   :  { %34 = dma.hbm_to_vmem [thread:$0]  %s417_s1, 512, %s29_s13, [#allocation7], %s321_s24, %s321_s24, %s322_s25  }
  0x14   :  { %s247_s30 = scalar_lea.hbm %s416_s0, 256 }
  0x15   :  { %p248_p8 = scmp.ne.s32.totalorder %s416_s0, %s247_s30  ;;  %p251_p9 = scmp.lt.u32.totalorder %s247_s30, %s416_s0 }
  0x17   :  { %p253_p10 = pnand %p251_p9, %p248_p8 }
  0x19   :  { %256 = shalt.err (!%p253_p10)
}
  0x1a   :  { %s257_s8 = scalar_lea.vmem %s346_s15, 256  ;;  %p262_p12 = scmp.lt.s32.totalorder %s346_s15, %s346_s15 }
  0x1b   :  { %p258_p11 = scmp.ne.s32.totalorder %s346_s15, %s257_s8  ;;  %p263_p13 = scmp.lt.s32.totalorder %s257_s8, %s257_s8 }
  0x1d   :  { %p264_p0 = por %p263_p13, %p262_p12 }
  0x1f   :  { %p265_p1 = pnand %p264_p0, %p258_p11 }
  0x21   :  { %268 = shalt.err (!%p265_p1)
}
  0x22   :  { %22 = dma.hbm_to_vmem [thread:$0]  %s416_s0, 256, %s346_s15, [#allocation4], %s321_s24, %s321_s24, %s322_s25  }
  0x23   :  { %s323_s10 = smov [#allocation8]   ;;  %s269_s14 = scalar_lea.hbm %s418_s2, 16 }
  0x24   :  { %s41_s11 = sshll.u32 %s323_s10, 4  ;;  %p270_p2 = scmp.ne.s32.totalorder %s418_s2, %s269_s14  ;;  %s42_s11 = int_to_ptr.vmem [resolvable:$true] %s41_s11 }
  0x25   :  { %p273_p3 = scmp.lt.u32.totalorder %s269_s14, %s418_s2 }
  0x27   :  { %p275_p4 = pnand %p273_p3, %p270_p2 }
  0x29   :  { %278 = shalt.err (!%p275_p4)
}
  0x2a   :  { %s279_s20 = scalar_lea.vmem %s42_s11, 16  ;;  %s283_s0 = scalar_lea.vmem %s42_s11, 32 }
  0x2b   :  { %p280_p5 = scmp.ne.s32.totalorder %s42_s11, %s279_s20  ;;  %p284_p6 = scmp.lt.s32.totalorder %s42_s11, %s42_s11 }
  0x2c   :  { %p285_p7 = scmp.lt.s32.totalorder %s283_s0, %s279_s20 }
  0x2e   :  { %p286_p8 = por %p285_p7, %p284_p6 }
  0x30   :  { %p287_p9 = pnand %p286_p8, %p280_p5 }
  0x32   :  { %290 = shalt.err (!%p287_p9)
}
  0x33   :  { %44 = dma.hbm_to_vmem [thread:$0]  %s418_s2, 16, %s42_s11, [#allocation7]  }
  0x34   :  { %313 = dma.done.wait [#allocation4], 256  }
  0x35   :  { %314 = vsyncadd [#allocation4], 4294967040 }
  0x36   :  { %315 = dma.done.wait [#allocation7], 528  }
  0x37   :  { %316 = vsyncadd [#allocation7], 4294966768  ;;  %vm58_vm0 = vcmask 785408   ;;  %v324_v0 = vmov 0.0   ;;  %vm69_vm1 = vcmask 261120   ;;  %v65_v1 = vld [vmem:[#allocation6] sm:$0xff] }
  0x38   :  { %60 = vst.msk [vmem:[#allocation2 + $0x8] sm:$0xff] %vm58_vm0, %v324_v0  ;;  %59 = vst.msk [vmem:[#allocation2] sm:$0xff] %vm58_vm0, %v324_v0  ;;  %v66_v2 = vld [vmem:[#allocation6 + $0x8] sm:$0xff]  ;;  %v67_v3 = vld [vmem:[#allocation6 + $0x10] sm:$0xff]  ;;  %s325_s2 = smov [#allocation9]  }
  0x39   :  { %v210_v4 = vpack.c.bf16 %v66_v2, %v65_v1  ;;  %v68_v5 = vld [vmem:[#allocation6 + $0x18] sm:$0xff]  ;;  %v63_v6 = vld [vmem:[#allocation3] sm:$0xff]  ;;  %v192_v15 = vld [vmem:[#allocation8] ss:$0 sm:$0xff]  ;;  %s177_s22 = sshll.u32 %s325_s2, 4  ;;  %s178_s22 = int_to_ptr.vmem [resolvable:$true] %s177_s22 }
  0x3a   :  { %v214_v7 = vpack.c.bf16 %v68_v5, %v67_v3  ;;  %207 = vmatprep.mubr.msk.f32.mxu0 %vm69_vm1, %v63_v6  ;;  %v64_v8 = vld [vmem:[#allocation3 + $0x8] sm:$0xff]  ;;  %s291_s23 = scalar_lea.vmem %s178_s22, 256  ;;  %p296_p11 = scmp.lt.s32.totalorder %s178_s22, %s178_s22 }
  0x3b   :  { %211 = vmatprep.subr.bf16.mxu0 %v210_v4  ;;  %p292_p10 = scmp.ne.s32.totalorder %s178_s22, %s291_s23  ;;  %p297_p12 = scmp.lt.s32.totalorder %s291_s23, %s291_s23 }
  0x3c   :  { %213 = vmatpush3.bf16.msra.mxu0 %v210_v4 }
  0x3d   :  { %215 = vmatprep.subr.bf16.mxu0 %v214_v7  ;;  %p298_p13 = por %p297_p12, %p296_p11 }
  0x3f   :  { %v62_v9 = vld [vmem:[#allocation2 + $0x8] sm:$0xff]  ;;  %v61_v10 = vld [vmem:[#allocation2] sm:$0xff]  ;;  %p299_p0 = pnand %p298_p13, %p292_p10 }
  0x40   :  { %217 = vmatpush3.bf16.msra.mxu0 %v214_v7 }
  0x43   :  { %208 = vmatmul.mubr.msk.f32.vlgmr.msra.gmra.mrb[0].mxu0 %vm69_vm1, %v64_v8 }
 0x116   :  { %v209_v11 = vpop.f32.mrb[0].mxu0 }
 0x117   :  { %v152_v12 = vadd.f32 %v209_v11, %v62_v9  ;;  %v142_v13 = vpop.f32.mrb[1].mxu0 }
 0x118   :  { %v151_v14 = vadd.f32 %v142_v13, %v61_v10 }
 0x119   :  { %155 = vst.msk [vmem:[#allocation2 + $0x8] sm:$0xff] %vm58_vm0, %v152_v12 }
 0x11a   :  { %154 = vst.msk [vmem:[#allocation2] sm:$0xff] %vm58_vm0, %v151_v14 }
 0x120   :  { %v160_v16 = vld [vmem:[#allocation2 + $0x8] sm:$0xff] }
 0x121   :  { %v159_v17 = vld [vmem:[#allocation2] sm:$0xff]  ;;  %v169_v18 = vadd.f32 %v192_v15, %v160_v16 }
 0x122   :  { %v168_v19 = vadd.f32 %v192_v15, %v159_v17 }
 0x123   :  { %171 = vst.msk [vmem:[#allocation9 + $0x8] sm:$0xff] %vm58_vm0, %v169_v18 }
 0x124   :  { %170 = vst.msk [vmem:[#allocation9] sm:$0xff] %vm58_vm0, %v168_v19 }
 0x125   :  { %302 = shalt.err (!%p299_p0)
}
 0x126   :  { %s303_s28 = scalar_lea.hbm %s419_s3, 256 }
 0x127   :  { %p304_p1 = scmp.ne.s32.totalorder %s419_s3, %s303_s28  ;;  %p307_p2 = scmp.lt.u32.totalorder %s303_s28, %s419_s3 }
 0x129   :  { %p309_p3 = pnand %p307_p2, %p304_p1 }
 0x12b   :  { %312 = shalt.err (!%p309_p3)
}
 0x12c   :  { %183 = dma.vmem_to_hbm [thread:$0]  %s178_s22, 256, %s419_s3, [#allocation5], %s321_s24, %s321_s24, %s322_s25  }
 0x12d   :  { %317 = dma.done.wait [#allocation5], 256  }
 0x12e   :  { %318 = vsyncadd [#allocation5], 4294967040 }
 0x12f   :  { %187 = vsyncpa [#allocation4], 1 }
 0x130   :  { %188 = vsyncpa [#allocation7], 1 }
 0x131   :  { %189 = vsyncpa [#allocation5], 1 }

</bundles_post_ra>
